<compile_context>
chip_gen: v5e
topology: v5e:2x2
jax: 0.10.0
libtpu: 0.0.40
codegen_flags: <defaults>
</compile_context>

<pallas_src>
import functools

import numpy as np
import jax
import jax.numpy as jnp
from jax.experimental import pallas as pl
from jax.experimental.pallas import tpu as pltpu


def _nconv_gemm_kernel(adj_ref, x_ref, out_ref):
    # adj_ref: (tv, N)  adjacency row tile, full contraction width resident
    # x_ref:   (N, tm)  lane-dense column panel of X2 = reshape(transpose(x))
    # out_ref: (tv, tm)
    out_ref[...] = jnp.dot(
        adj_ref[...], x_ref[...], preferred_element_type=jnp.float32
    ).astype(out_ref.dtype)


def _pick_tiles(N, M, row_tile, m_tile, in_bytes, out_bytes, budget_bytes):
    """Pick (tv, tm) so double-buffered blocks fit the VMEM budget."""
    tv = N if N <= row_tile else row_tile
    tm = M if M <= m_tile else m_tile

    def vmem_need(tv_, tm_):
        # double-buffered adj / x / out blocks
        return 2 * (tv_ * N * in_bytes + N * tm_ * in_bytes + tv_ * tm_ * out_bytes)

    # Shrink the lane tile first, then the row tile, keeping (8,128) legality.
    while vmem_need(tv, tm) > budget_bytes and tm > 256 and tm % 256 == 0:
        tm //= 2
    while vmem_need(tv, tm) > budget_bytes and tv > 8 and tv % 16 == 0:
        tv //= 2
    # TODO(synk): add a K-tiled (accumulator + "arbitrary" axis) fallback for
    # graphs so large that even minimum full-K tiles exceed the VMEM budget.
    return tv, tm, vmem_need(tv, tm)


@functools.partial(jax.jit, static_argnames=("row_tile", "m_tile", "compute_dtype"))
def nconv_forward(x, adj, *, row_tile=512, m_tile=512, compute_dtype=jnp.bfloat16):
    """Pallas implementation of NConv.forward(x, adj).

    x:   (B, C, N, T) node features
    adj: (N, N) adjacency
    returns (B, C, N, T) with out[b, c, v, t] = sum_w adj[v, w] * x[b, c, w, t]
    """
    B, C, N, T = x.shape
    assert adj.shape == (N, N), (adj.shape, N)
    assert row_tile % 8 == 0 and m_tile % 128 == 0
    M = B * C * T
    out_dtype = x.dtype
    cdt = x.dtype if compute_dtype is None else compute_dtype
    in_bytes = np.dtype(cdt).itemsize

    # Fold (B, C, T) into one lane-dense GEMM minor dim (cast fuses with the
    # transpose on the XLA side).
    x2 = jnp.transpose(x.astype(cdt), (2, 0, 1, 3)).reshape(N, M)
    adj2 = adj.astype(cdt)

    # VMEM-aware tile selection: v7x has 64 MiB physical VMEM, v5e/v6e 128 MiB.
    try:
        info = pltpu.get_tpu_info()
        vmem_cap = int(getattr(info, "vmem_capacity_bytes", 64 * 1024 * 1024))
    except Exception:
        vmem_cap = 64 * 1024 * 1024  # conservative (v7x-sized) fallback
    budget = min(int(0.75 * vmem_cap), 100 * 1024 * 1024)

    tv, tm, need = _pick_tiles(N, M, row_tile, m_tile, in_bytes, in_bytes, budget)

    # Raise the scoped-VMEM cap (the 16/32 MiB defaults are binding), but stay
    # inside the physical budget (matters on v7x).
    vmem_limit = int(min(max(need + (16 << 20), 64 << 20), budget))

    num_j = pl.cdiv(M, tm)  # lane (B*C*T) tiles  -> outer grid axis
    num_i = pl.cdiv(N, tv)  # adjacency row tiles -> inner axis (keeps x resident)

    cost = pl.CostEstimate(
        flops=2 * B * C * N * N * T,
        transcendentals=0,
        bytes_accessed=(N * M + N * N) * in_bytes + N * M * in_bytes,
    )

    out2 = pl.pallas_call(
        _nconv_gemm_kernel,
        out_shape=jax.ShapeDtypeStruct((N, M), cdt),
        grid_spec=pltpu.PrefetchScalarGridSpec(
            num_scalar_prefetch=0,
            grid=(num_j, num_i),
            in_specs=[
                # adj row tile: tiny; re-fetched per inner step.
                pl.BlockSpec((tv, N), lambda j, i: (i, 0)),
                # X2 column panel: block index independent of the inner axis i
                # -> stays resident in VMEM across the row-tile sweep, so x is
                # streamed from HBM exactly once.
                pl.BlockSpec((N, tm), lambda j, i: (0, j)),
            ],
            out_specs=pl.BlockSpec((tv, tm), lambda j, i: (i, j)),
        ),
        compiler_params=pltpu.CompilerParams(
            # Every output block is written exactly once -> both axes parallel
            # (lets the v7x megacore shard the grid across its 2 TensorCores).
            dimension_semantics=("parallel", "parallel"),
            vmem_limit_bytes=vmem_limit,
        ),
        cost_estimate=cost,
    )(adj2, x2)

    # Undo the lane folding; the upcast back to the input dtype fuses with the
    # transpose on the XLA side (transpose reads the narrow kernel output).
    out = jnp.transpose(out2.reshape(N, B, C, T), (1, 2, 0, 3)).astype(out_dtype)
    return out


def _reference_forward(x, adj):
    return jnp.einsum('ncwl,vw->ncvl', x, adj,
                      precision=jax.lax.Precision.HIGHEST)


if __name__ == "__main__":
    key = jax.random.PRNGKey(0)

    # (shape, tile overrides).  Case 3 forces multi-tile grids with partial
    # (non-divisible) edge blocks on both the row and lane axes.
    cases = [
        ((2, 4, 16, 8), {}),
        ((1, 3, 40, 12), {}),
        ((2, 5, 133, 20), dict(row_tile=64, m_tile=128)),
    ]

    for shape, kw in cases:
        B, C, N, T = shape
        key, kx, ka = jax.random.split(key, 3)
        x = jax.random.normal(kx, (B, C, N, T), jnp.float32)
        adj = jax.random.normal(ka, (N, N), jnp.float32)

        # Full-f32 path: validates blocking / indexing against the reference.
        out_f32 = jax.block_until_ready(
            nconv_forward(x, adj, compute_dtype=None, **kw))
        ref = _reference_forward(x, adj)
        assert out_f32.shape == (B, C, N, T)
        assert out_f32.dtype == x.dtype
        assert jnp.allclose(out_f32, ref, atol=1e-2, rtol=1e-2), \
            f"f32 path mismatch at shape {shape}"

        # Default bf16 fast path: compare against a bf16-rounded-input reference
        # (f32 accumulation on both sides; only the final rounding differs).
        out_bf16 = jax.block_until_ready(nconv_forward(x, adj, **kw))
        ref_bf16 = _reference_forward(
            x.astype(jnp.bfloat16).astype(jnp.float32),
            adj.astype(jnp.bfloat16).astype(jnp.float32))
        assert out_bf16.shape == (B, C, N, T)
        assert out_bf16.dtype == x.dtype
        assert jnp.allclose(out_bf16, ref_bf16, atol=1e-1, rtol=5e-2), \
            f"bf16 path mismatch at shape {shape}"

    print("KERNEL_OK")
</pallas_src>

<mosaic_0001>
module attributes {stable_mosaic.version = 11 : i64} {
  func.func @_nconv_gemm_kernel(%arg0: i32, %arg1: i32, %arg2: memref<16x16xf32, #tpu.memory_space<vmem>>, %arg3: memref<16x64xf32, #tpu.memory_space<vmem>>, %arg4: memref<16x64xf32, #tpu.memory_space<vmem>>) attributes {dimension_semantics = [#tpu.dimension_semantics<parallel>, #tpu.dimension_semantics<parallel>], iteration_bounds = array<i64: 1, 1>, scalar_prefetch = 0 : i64, scratch_operands = 0 : i64, tpu.core_type = #tpu.core_type<tc>, window_params = [{transform_indices = @transform_0, window_bounds = array<i64: 16, 16>}, {transform_indices = @transform_1, window_bounds = array<i64: 16, 64>}, {transform_indices = @transform_2, window_bounds = array<i64: 16, 64>}]} {
    %c0 = arith.constant 0 : index
    %c0_0 = arith.constant 0 : index
    %0 = vector.load %arg2[%c0, %c0_0] : memref<16x16xf32, #tpu.memory_space<vmem>>, vector<16x16xf32>
    %c0_1 = arith.constant 0 : index
    %c0_2 = arith.constant 0 : index
    %1 = vector.load %arg3[%c0_1, %c0_2] : memref<16x64xf32, #tpu.memory_space<vmem>>, vector<16x64xf32>
    %cst = arith.constant dense<0.000000e+00> : vector<16x64xf32>
    %2 = tpu.matmul %0, %1, %cst {dimension_numbers = #tpu.dot_dimension_numbers<[1], [0], [0], [1], [0, 0, 1, 1], [], []>} : vector<16x16xf32>, vector<16x64xf32>, vector<16x64xf32> -> vector<16x64xf32>
    %c0_3 = arith.constant 0 : index
    %c0_4 = arith.constant 0 : index
    %3 = vector.load %arg4[%c0_3, %c0_4] : memref<16x64xf32, #tpu.memory_space<vmem>>, vector<16x64xf32>
    tpu.vector_store %arg4[%c0_3, %c0_4], %2 {strides = array<i32>} : memref<16x64xf32, #tpu.memory_space<vmem>>, vector<16x64xf32>,
    return
  }
  func.func @transform_0(%arg0: i32, %arg1: i32) -> (i32, i32) {
    %c0_i32 = arith.constant 0 : i32
    %c0_i32_0 = arith.constant 0 : i32
    return %arg1, %c0_i32 : i32, i32
  }
  func.func @transform_1(%arg0: i32, %arg1: i32) -> (i32, i32) {
    %c0_i32 = arith.constant 0 : i32
    %c0_i32_0 = arith.constant 0 : i32
    return %c0_i32, %arg0 : i32, i32
  }
  func.func @transform_2(%arg0: i32, %arg1: i32) -> (i32, i32) {
    %c0_i32 = arith.constant 0 : i32
    return %arg1, %arg0 : i32, i32
  }
}

</mosaic_0001>

<bundles_post_ra>
// kernel: nconv_forward.1
= control target key start
LH: loop header
LB: loop body
LE: loop exit
PB: predicated region body
PF: predicated region fallthrough
CT: control target
= control target key end

     0   :  { %vm15_vm0 = vcmask 130048   ;;  %vm45_vm1 = vcmask 523264   ;;  %s89_s1 = inlined_call_operand.vmem [shape: f32[16,64], index: 1, kind: input, shape index: {}]   ;;  %s90_s0 = inlined_call_operand.vmem [shape: f32[16,16], index: 0, kind: input, shape index: {}]   ;;  %s91_s2 = inlined_call_operand.vmem [shape: f32[16,64], index: 2, kind: output, shape index: {}]  }
   0x1   :  { %v14_v0 = vld [vmem:[%s89_s1 + $0x8] sm:$0xff]  ;;  %v13_v1 = vld [vmem:[%s89_s1] sm:$0xff] }
   0x2   :  { %36 = vmatpush.msra.mxu0 %v14_v0  ;;  %54 = vmatpush.msra.mxu1 %v14_v0  ;;  %v11_v2 = vld [vmem:[%s90_s0] sm:$0xff]  ;;  %v12_v3 = vld [vmem:[%s90_s0 + $0x8] sm:$0xff] }
   0x4   :  { %37 = vmatpush.msra.mxu0 %v13_v1  ;;  %55 = vmatpush.msra.mxu1 %v13_v1 }
   0x5   :  { %52 = vmatmul.msk.f32.vlgmr.msra.gmra.mxu0 %vm15_vm0, %v11_v2  ;;  %53 = vmatmul.msk.f32.vlgmr.msra.gmra.mxu1 %vm15_vm0, %v12_v3 }
  0x82   :  { %v39_v4 = vpop.f32.mrf.mxu0  ;;  %v42_v5 = vpop.f32.mrf.mxu1 }
  0x83   :  { %46 = vst.msk [vmem:[%s91_s2] sm:$0xff] %vm45_vm1, %v39_v4 }
  0x84   :  { %47 = vst.msk [vmem:[%s91_s2 + $0x8] sm:$0xff] %vm45_vm1, %v42_v5 }

</bundles_post_ra>
